<compile_context>
chip_gen: v5e
topology: v5e:2x2
jax: 0.10.0
libtpu: 0.0.40
codegen_flags: <defaults>
</compile_context>

<pallas_src>
import functools

import jax
import jax.numpy as jnp
from jax.experimental import pallas as pl
from jax.experimental.pallas import tpu as pltpu

_LANE = 128
_TARGET_TILE_BYTES = 2 * 1024 * 1024    # per-block budget (input-dtype bytes)
_VMEM_LIMIT_BYTES = 48 * 1024 * 1024    # v7x-safe (64 MiB physical per TC)


def _sum_keep(x, axes):
    """Sequential single-axis keepdims sums (simple, safe Mosaic lowering)."""
    for ax in sorted(axes, reverse=True):
        x = jnp.sum(x, axis=ax, keepdims=True)
    return x


# --------------------- Path A: fused kernel (small channel slabs) -----------

def _fused_group_norm_kernel(x_ref, o_ref):
    """x_ref/o_ref: (N, Cb, S, L). Per-channel two-pass zero-mean/unit-std."""
    x = x_ref[...].astype(jnp.float32)
    n = x.shape[0] * x.shape[2] * x.shape[3]
    mean = _sum_keep(x, (0, 2, 3)) / jnp.float32(n)            # (1, Cb, 1, 1)
    d = x - mean
    # torch.Tensor.std() default is unbiased (ddof=1); n == 1 -> nan, as torch.
    var = _sum_keep(d * d, (0, 2, 3)) / jnp.float32(n - 1)
    o_ref[...] = (d * jax.lax.rsqrt(var)).astype(o_ref.dtype)


def _fused_call(x4, cb):
    n, g, s, l = x4.shape
    size = x4.size
    spec = pl.BlockSpec((n, cb, s, l), lambda i: (0, i, 0, 0))
    return pl.pallas_call(
        _fused_group_norm_kernel,
        out_shape=jax.ShapeDtypeStruct(x4.shape, x4.dtype),
        grid=(g // cb,),
        in_specs=[spec],
        out_specs=spec,
        compiler_params=pltpu.CompilerParams(
            dimension_semantics=("parallel",),
            vmem_limit_bytes=_VMEM_LIMIT_BYTES),
        cost_estimate=pl.CostEstimate(
            flops=5 * size, transcendentals=g,
            bytes_accessed=2 * size * x4.dtype.itemsize),
    )(x4)


# --------------------- Path B: M-tiled stats + normalize (large slabs) ------

def _stats_kernel(x_ref, mean_ref, rstd_ref, mean_acc, m2_acc, *, total_n):
    """Chunked-centered (Chan/Welford) stats over the M-tiles of one group.

    x_ref: (N, TS, L) tile `st` of group `g` (grid = (G, S//TS), st innermost).
    """
    st = pl.program_id(1)
    nb = x_ref.shape[0] * x_ref.shape[1] * x_ref.shape[2]      # static tile size

    @pl.when(st == 0)
    def _():
        mean_acc[...] = jnp.zeros_like(mean_acc)
        m2_acc[...] = jnp.zeros_like(m2_acc)

    # Per-tile two-pass stats.  x_ref is re-read for the centered pass so the
    # f32 upcast's live range stays short (VMEM loads are cheap).
    mu_b = _sum_keep(x_ref[...].astype(jnp.float32), (0, 1, 2)) / jnp.float32(nb)
    d = x_ref[...].astype(jnp.float32) - mu_b
    m2_b = _sum_keep(d * d, (0, 1, 2))

    # Combine with the running (mean, M2): no sum-of-squares cancellation.
    n_a = jnp.float32(nb) * st.astype(jnp.float32)
    n_t = n_a + jnp.float32(nb)
    delta = mu_b - mean_acc[...]
    mean_acc[...] = mean_acc[...] + delta * (jnp.float32(nb) / n_t)
    m2_acc[...] = m2_acc[...] + m2_b + (delta * delta) * (n_a * jnp.float32(nb) / n_t)

    @pl.when(st == pl.num_programs(1) - 1)
    def _():
        # Unbiased (ddof=1) std, matching torch.Tensor.std().
        var = m2_acc[...] / jnp.float32(total_n - 1)
        mean_ref[...] = mean_acc[...]
        rstd_ref[...] = jax.lax.rsqrt(var)


def _normalize_kernel(x_ref, mean_ref, rstd_ref, o_ref):
    x = x_ref[...].astype(jnp.float32)
    o_ref[...] = ((x - mean_ref[...]) * rstd_ref[...]).astype(o_ref.dtype)


def _tiled_call(x4, ts):
    n, g, s, l = x4.shape
    size = x4.size
    itemsize = x4.dtype.itemsize
    n_tiles = s // ts
    x_spec = pl.BlockSpec((n, pl.Squeezed(), ts, l), lambda gi, st: (0, gi, st, 0))
    stat_spec = pl.BlockSpec((1, 1, 1), lambda gi, st: (gi, 0, 0))

    # TODO(synk): for very small G on v7x, add a parallel split of the M-tiles
    # (partial stats + tiny combine pass) so both TensorCores get work.
    mean, rstd = pl.pallas_call(
        functools.partial(_stats_kernel, total_n=n * s * l),
        out_shape=(jax.ShapeDtypeStruct((g, 1, 1), jnp.float32),
                   jax.ShapeDtypeStruct((g, 1, 1), jnp.float32)),
        grid=(g, n_tiles),
        in_specs=[x_spec],
        out_specs=(stat_spec, stat_spec),
        scratch_shapes=[pltpu.VMEM((1, 1, 1), jnp.float32),
                        pltpu.VMEM((1, 1, 1), jnp.float32)],
        compiler_params=pltpu.CompilerParams(
            dimension_semantics=("parallel", "arbitrary"),
            vmem_limit_bytes=_VMEM_LIMIT_BYTES),
        cost_estimate=pl.CostEstimate(
            flops=4 * size, transcendentals=g,
            bytes_accessed=size * itemsize),
    )(x4)

    return pl.pallas_call(
        _normalize_kernel,
        out_shape=jax.ShapeDtypeStruct(x4.shape, x4.dtype),
        grid=(g, n_tiles),
        in_specs=[x_spec, stat_spec, stat_spec],
        out_specs=x_spec,
        compiler_params=pltpu.CompilerParams(
            dimension_semantics=("parallel", "parallel"),
            vmem_limit_bytes=_VMEM_LIMIT_BYTES),
        cost_estimate=pl.CostEstimate(
            flops=2 * size, transcendentals=0,
            bytes_accessed=2 * size * itemsize),
    )(x4, mean, rstd)


# --------------------------------- wrapper ----------------------------------

def _group_view(x, per_channel):
    """Free re-view of x as (N, G, S, L); group g is normalized over axes (0,2,3)."""
    if per_channel:
        n, g = x.shape[0], x.shape[1]
        m = 1
        for d in x.shape[2:]:
            m *= int(d)
    else:
        n, g = 1, 1
        m = x.size
    if m % _LANE == 0:
        s, l = m // _LANE, _LANE          # lane-dense, sublane-rich
    else:
        # TODO(synk): masked lane-tiled path for spatial sizes not divisible by
        # 128 whose per-channel slab exceeds the single-block VMEM budget.
        s, l = 1, m
    return x.reshape(n, g, s, l)


def _largest_divisor_leq(n, cap, start=1, step=1):
    best = None
    d = start
    top = min(n, cap)
    while d <= top:
        if n % d == 0:
            best = d
        d += step
    return best


def per_channel_transform(x: jax.Array, per_channel: bool = True) -> jax.Array:
    """JAX equivalent of PerChannelTransform.forward for a single key.

    per_channel=True  -> augment_fn applied to each whole-batch channel slice x[:, c]
    per_channel=False -> augment_fn applied to the whole tensor (BaseTransform path)
    """
    shape = x.shape
    x4 = _group_view(x, per_channel)
    n, g, s, l = x4.shape
    itemsize = x.dtype.itemsize
    slab_bytes = n * s * l * itemsize          # one group's data

    if slab_bytes <= _TARGET_TILE_BYTES:
        # Small slabs: pack several channels per grid step (fewer, larger DMAs;
        # amortized per-step overhead) and fuse stats + normalize.
        cb = _largest_divisor_leq(g, max(1, _TARGET_TILE_BYTES // slab_bytes)) or 1
        out4 = _fused_call(x4, cb)
    else:
        # Large slabs: M-tiled stats pass + tiled normalize pass. Blocks stay
        # ~2 MiB -> no VMEM OOM cliff (v7x-safe), near-roofline DMAs.
        row_bytes = n * l * itemsize
        if s % 8 == 0:
            cap = max(8, (_TARGET_TILE_BYTES // row_bytes) // 8 * 8)
            ts = _largest_divisor_leq(s, cap, start=8, step=8) or s
        else:
            ts = s
        out4 = _tiled_call(x4, ts)
    return out4.reshape(shape)


# --------------------------------- reference --------------------------------

def _reference(x: jax.Array, per_channel: bool = True) -> jax.Array:
    """Plain-JAX reference mirroring the PyTorch per-channel loop."""
    if per_channel:
        outs = []
        for c in range(x.shape[1]):
            sl = x[:, c]
            mean = sl.mean()
            std = jnp.sqrt(jnp.sum((sl - mean) ** 2) / (sl.size - 1))
            outs.append((sl - mean) / std)
        return jnp.stack(outs, axis=1)
    mean = x.mean()
    std = jnp.sqrt(jnp.sum((x - mean) ** 2) / (x.size - 1))
    return (x - mean) / std


if __name__ == "__main__":
    key = jax.random.PRNGKey(0)
    k1, k2 = jax.random.split(key)

    # Small NCHW input: fused path (per_channel=True) and BaseTransform path.
    x = jax.random.normal(k1, (2, 4, 16, 16), dtype=jnp.float32) * 3.0 + 1.5

    y = jax.block_until_ready(per_channel_transform(x, per_channel=True))
    assert y.shape == x.shape and y.dtype == x.dtype
    assert jnp.allclose(y, _reference(x, per_channel=True), atol=2e-5, rtol=2e-5)

    y2 = jax.block_until_ready(per_channel_transform(x, per_channel=False))
    assert jnp.allclose(y2, _reference(x, per_channel=False), atol=2e-5, rtol=2e-5)

    # Larger, mean-offset input: exercises the M-tiled stats+normalize path and
    # its chunked-centered (cancellation-safe) statistics.
    xb = jax.random.normal(k2, (2, 2, 512, 576), dtype=jnp.float32) * 2.0 + 5.0
    yb = jax.block_until_ready(per_channel_transform(xb, per_channel=True))
    assert jnp.allclose(yb, _reference(xb, per_channel=True), atol=1e-3, rtol=1e-3)

    print("KERNEL_OK")
</pallas_src>

<mosaic_0001>
module attributes {stable_mosaic.version = 11 : i64} {
  func.func @_fused_group_norm_kernel(%arg0: i32, %arg1: memref<2x4x2x128xf32, #tpu.memory_space<vmem>>, %arg2: memref<2x4x2x128xf32, #tpu.memory_space<vmem>>) attributes {dimension_semantics = [#tpu.dimension_semantics<parallel>], iteration_bounds = array<i64: 1>, scalar_prefetch = 0 : i64, scratch_operands = 0 : i64, tpu.core_type = #tpu.core_type<tc>, window_params = [{transform_indices = @transform_0, window_bounds = array<i64: 2, 4, 2, 128>}, {transform_indices = @transform_1, window_bounds = array<i64: 2, 4, 2, 128>}]} {
    %c0 = arith.constant 0 : index
    %c0_0 = arith.constant 0 : index
    %c0_1 = arith.constant 0 : index
    %c0_2 = arith.constant 0 : index
    %0 = vector.load %arg1[%c0, %c0_0, %c0_1, %c0_2] : memref<2x4x2x128xf32, #tpu.memory_space<vmem>>, vector<2x4x2x128xf32>
    %cst = arith.constant dense<0.000000e+00> : vector<2x4x2xf32>
    %1 = vector.multi_reduction <add>, %0, %cst [3] : vector<2x4x2x128xf32> to vector<2x4x2xf32>
    %2 = vector.shape_cast %1 : vector<2x4x2xf32> to vector<2x4x2x1xf32>
    %cst_3 = arith.constant dense<0.000000e+00> : vector<2x4x1xf32>
    %3 = vector.multi_reduction <add>, %2, %cst_3 [2] : vector<2x4x2x1xf32> to vector<2x4x1xf32>
    %4 = vector.shape_cast %3 : vector<2x4x1xf32> to vector<2x4x1x1xf32>
    %cst_4 = arith.constant dense<0.000000e+00> : vector<4x1x1xf32>
    %5 = vector.multi_reduction <add>, %4, %cst_4 [0] : vector<2x4x1x1xf32> to vector<4x1x1xf32>
    %6 = vector.shape_cast %5 : vector<4x1x1xf32> to vector<1x4x1x1xf32>
    %cst_5 = arith.constant 5.120000e+02 : f32
    %7 = vector.broadcast %cst_5 : f32 to vector<1x4x1x1xf32>
    %8 = arith.divf %6, %7 : vector<1x4x1x1xf32>
    %9 = vector.broadcast %8 : vector<1x4x1x1xf32> to vector<2x4x2x128xf32>
    %10 = arith.subf %0, %9 : vector<2x4x2x128xf32>
    %11 = arith.mulf %10, %10 : vector<2x4x2x128xf32>
    %cst_6 = arith.constant dense<0.000000e+00> : vector<2x4x2xf32>
    %12 = vector.multi_reduction <add>, %11, %cst_6 [3] : vector<2x4x2x128xf32> to vector<2x4x2xf32>
    %13 = vector.shape_cast %12 : vector<2x4x2xf32> to vector<2x4x2x1xf32>
    %cst_7 = arith.constant dense<0.000000e+00> : vector<2x4x1xf32>
    %14 = vector.multi_reduction <add>, %13, %cst_7 [2] : vector<2x4x2x1xf32> to vector<2x4x1xf32>
    %15 = vector.shape_cast %14 : vector<2x4x1xf32> to vector<2x4x1x1xf32>
    %cst_8 = arith.constant dense<0.000000e+00> : vector<4x1x1xf32>
    %16 = vector.multi_reduction <add>, %15, %cst_8 [0] : vector<2x4x1x1xf32> to vector<4x1x1xf32>
    %17 = vector.shape_cast %16 : vector<4x1x1xf32> to vector<1x4x1x1xf32>
    %cst_9 = arith.constant 5.110000e+02 : f32
    %18 = vector.broadcast %cst_9 : f32 to vector<1x4x1x1xf32>
    %19 = arith.divf %17, %18 : vector<1x4x1x1xf32>
    %20 = math.rsqrt %19 : vector<1x4x1x1xf32>
    %21 = vector.broadcast %20 : vector<1x4x1x1xf32> to vector<2x4x2x128xf32>
    %22 = arith.mulf %10, %21 : vector<2x4x2x128xf32>
    %c0_10 = arith.constant 0 : index
    %c0_11 = arith.constant 0 : index
    %c0_12 = arith.constant 0 : index
    %c0_13 = arith.constant 0 : index
    %23 = vector.load %arg2[%c0_10, %c0_11, %c0_12, %c0_13] : memref<2x4x2x128xf32, #tpu.memory_space<vmem>>, vector<2x4x2x128xf32>
    tpu.vector_store %arg2[%c0_10, %c0_11, %c0_12, %c0_13], %22 {strides = array<i32>} : memref<2x4x2x128xf32, #tpu.memory_space<vmem>>, vector<2x4x2x128xf32>,
    return
  }
  func.func @transform_0(%arg0: i32) -> (i32, i32, i32, i32) {
    %c0_i32 = arith.constant 0 : i32
    %c0_i32_0 = arith.constant 0 : i32
    %c0_i32_1 = arith.constant 0 : i32
    %c0_i32_2 = arith.constant 0 : i32
    return %c0_i32, %arg0, %c0_i32_0, %c0_i32_1 : i32, i32, i32, i32
  }
  func.func @transform_1(%arg0: i32) -> (i32, i32, i32, i32) {
    %c0_i32 = arith.constant 0 : i32
    %c0_i32_0 = arith.constant 0 : i32
    %c0_i32_1 = arith.constant 0 : i32
    %c0_i32_2 = arith.constant 0 : i32
    return %c0_i32, %arg0, %c0_i32_0, %c0_i32_1 : i32, i32, i32, i32
  }
}

</mosaic_0001>

<bundles_post_ra>
// kernel: tpu_custom_call.1
= control target key start
LH: loop header
LB: loop body
LE: loop exit
PB: predicated region body
PF: predicated region fallthrough
CT: control target
= control target key end

     0   :  { %6 = vsyncpa [#allocation3], 0  ;;  %s518_s0 = inlined_call_operand.hbm [shape: f32[2,4,2,128], index: 0, kind: input, shape index: {}]   ;;  %s519_s1 = inlined_call_operand.hbm [shape: f32[2,4,2,128], index: 1, kind: output, shape index: {}]  }
   0x1   :  { %7 = vsyncpa [#allocation4], 0  ;;  %s12_s8 = sshll.u32 %s518_s0, 4  ;;  %s385_s9 = smov [#allocation2]   ;;  %s13_s8 = int_to_ptr.hbm [resolvable:$true] %s12_s8 }
   0x2   :  { %s14_s10 = sshll.u32 %s385_s9, 4  ;;  %s386_s11 = smov 32   ;;  %s15_s10 = int_to_ptr.vmem [resolvable:$true] %s14_s10 }
   0x3   :  { %s387_s12 = smov 2  }
   0x4   :  { %20 = dma.hbm_to_vmem [thread:$0]  %s13_s8, 256, %s15_s10, [#allocation3], %s386_s11, %s386_s11, %s387_s12  }
   0x5   :  { %381 = dma.done.wait [#allocation3], 256  }
   0x6   :  { %382 = vsyncadd [#allocation3], 4294967040  ;;  %vm33_vm0 = vcmask 1041408   ;;  %v407_v0 = vld [vmem:[#allocation2 + $0x8] sm:$0x3]  ;;  %v388_v16 = vmov 512.0  }
   0x7   :  { %v409_v1 = vld [vmem:[#allocation2 + $0x4] sm:$0x3]  ;;  %v411_v2 = vld [vmem:[#allocation2] sm:$0x3]  ;;  %v46_v3 = vsel %vm33_vm0, %v407_v0, 0.0  ;;  %321 = vrcp.f32 %v388_v16  ;;  %s390_s0 = smov [#allocation5]  }
   0x8   :  { %v40_v4 = vsel %vm33_vm0, %v409_v1, 0.0  ;;  %v34_v5 = vsel %vm33_vm0, %v411_v2, 0.0  ;;  %47 = vadd.xlane.f32.xlu2 %v46_v3  ;;  %v419_v6 = vld [vmem:[#allocation2 + $0xa] sm:$0x3]  ;;  %v421_v7 = vld [vmem:[#allocation2 + $0x6] sm:$0x3] }
   0x9   :  { %41 = vadd.xlane.f32.xlu1 %v40_v4  ;;  %35 = vadd.xlane.f32.xlu0 %v34_v5  ;;  %v423_v8 = vld [vmem:[#allocation2 + $0x2] sm:$0x3]  ;;  %v49_v9 = vsel %vm33_vm0, %v419_v6, 0.0  ;;  %v43_v10 = vsel %vm33_vm0, %v421_v7, 0.0  ;;  %v431_v12 = vld [vmem:[#allocation2 + $0xe] sm:$0x3] }
   0xa   :  { %v37_v11 = vsel %vm33_vm0, %v423_v8, 0.0  ;;  %v433_v13 = vld [vmem:[#allocation2 + $0xc] sm:$0x3]  ;;  %v55_v14 = vsel %vm33_vm0, %v431_v12, 0.0  ;;  %s300_s13 = sshll.u32 %s390_s0, 4  ;;  %s302_s16 = sshll.u32 %s519_s1, 4  ;;  %s301_s13 = int_to_ptr.vmem [resolvable:$true] %s300_s13  ;;  %s303_s16 = int_to_ptr.hbm [resolvable:$true] %s302_s16 }
   0xb   :  { %v52_v15 = vsel %vm33_vm0, %v433_v13, 0.0 }
   0xd   :  { %v322_v17 = vpop.eup %321 }
   0xe   :  { %v119_v18 = vmul.f32 512.0, %v322_v17  ;;  %vm123_vm1 = vweird.f32 %v322_v17 }
  0x10   :  { %50 = vadd.xlane.f32.xlu2 %v49_v9  ;;  %v120_v25 = vsub.f32 1.0, %v119_v18 }
  0x11   :  { %44 = vadd.xlane.f32.xlu1 %v43_v10  ;;  %38 = vadd.xlane.f32.xlu0 %v37_v11 }
  0x12   :  { %v121_v31 = vmul.f32 %v322_v17, %v120_v25 }
  0x14   :  { %v122_v44 = vadd.f32 %v322_v17, %v121_v31 }
  0x16   :  { %v124_v54 = vsel %vm123_vm1, %v322_v17, %v122_v44 }
  0x19   :  { %56 = vadd.xlane.f32.xlu1 %v55_v14  ;;  %53 = vadd.xlane.f32.xlu0 %v52_v15 }
  0x7b   :  { %v48_v19 = vpop.xlane.xlu2 %47 }
  0x7c   :  { %v42_v20 = vpop.xlane.xlu1 %41  ;;  %v86_v21 = vsel %vm33_vm0, %v48_v19, 0.0  ;;  %v36_v22 = vpop.xlane.xlu0 %35 }
  0x7d   :  { %v87_v23 = vrot.slane %v86_v21, 4  ;;  %v58_v24 = vsel %vm33_vm0, %v36_v22, 0.0  ;;  %v72_v28 = vsel %vm33_vm0, %v42_v20, 0.0 }
  0x7e   :  { %v59_v26 = vrot.slane %v58_v24, 4  ;;  %v73_v34 = vrot.slane %v72_v28, 4 }
  0x7f   :  { %v88_v27 = vadd.f32 %v87_v23, %v86_v21 }
  0x80   :  { %v60_v29 = vadd.f32 %v59_v26, %v58_v24  ;;  %v74_v48 = vadd.f32 %v73_v34, %v72_v28 }
  0x81   :  { %v89_v30 = vrot.slane %v88_v27, 2 }
  0x82   :  { %v61_v32 = vrot.slane %v60_v29, 2  ;;  %v75_v57 = vrot.slane %v74_v48, 2 }
  0x83   :  { %v90_v33 = vadd.f32 %v89_v30, %v88_v27  ;;  %v51_v35 = vpop.xlane.xlu2 %50 }
  0x84   :  { %v45_v36 = vpop.xlane.xlu1 %44  ;;  %v62_v37 = vadd.f32 %v61_v32, %v60_v29  ;;  %v93_v38 = vsel %vm33_vm0, %v51_v35, 0.0  ;;  %v39_v40 = vpop.xlane.xlu0 %38  ;;  %v76_v15 = vadd.f32 %v75_v57, %v74_v48  ;;  %v389_v57 = vmov 511.0  }
  0x85   :  { %v79_v39 = vsel %vm33_vm0, %v45_v36, 0.0  ;;  %v91_v41 = vrot.slane %v90_v33, 1  ;;  %v94_v42 = vrot.slane %v93_v38, 4  ;;  %v65_v46 = vsel %vm33_vm0, %v39_v40, 0.0 }
  0x86   :  { %v80_v43 = vrot.slane %v79_v39, 4  ;;  %v63_v45 = vrot.slane %v62_v37, 1  ;;  %v66_v52 = vrot.slane %v65_v46, 4  ;;  %v77_v28 = vrot.slane %v76_v15, 1 }
  0x87   :  { %v92_v47 = vadd.f32 %v91_v41, %v90_v33  ;;  %v95_v49 = vadd.f32 %v94_v42, %v93_v38  ;;  %323 = vrcp.f32 %v389_v57 }
  0x88   :  { %v81_v50 = vadd.f32 %v80_v43, %v79_v39  ;;  %v64_v51 = vadd.f32 %v63_v45, %v62_v37  ;;  %v67_v56 = vadd.f32 %v66_v52, %v65_v46  ;;  %v78_v35 = vadd.f32 %v77_v28, %v76_v15 }
  0x89   :  { %v96_v53 = vrot.slane %v95_v49, 2 }
  0x8a   :  { %v114_v55 = vadd.f32 %v92_v47, %v64_v51  ;;  %v82_v59 = vrot.slane %v81_v50, 2  ;;  %v68_v61 = vrot.slane %v67_v56, 2 }
  0x8b   :  { %v97_v58 = vadd.f32 %v96_v53, %v95_v49 }
  0x8c   :  { %v57_v60 = vpop.xlane.xlu1 %56  ;;  %v54_v63 = vpop.xlane.xlu0 %53  ;;  %v125_v3 = vmul.f32 %v124_v54, %v114_v55  ;;  %v69_v10 = vadd.f32 %v68_v61, %v67_v56  ;;  %v83_v16 = vadd.f32 %v82_v59, %v81_v50 }
  0x8d   :  { %v107_v62 = vsel %vm33_vm0, %v57_v60, 0.0  ;;  %v98_v4 = vrot.slane %v97_v58, 1  ;;  %v100_v9 = vsel %vm33_vm0, %v54_v63, 0.0  ;;  %v324_v60 = vpop.eup %323 }
  0x8e   :  { %v108_v5 = vrot.slane %v107_v62, 4  ;;  %v101_v11 = vrot.slane %v100_v9, 4  ;;  %v448_v14 = vsub.f32 %v411_v2, %v125_v3  ;;  %v70_v19 = vrot.slane %v69_v10, 1 }
  0x8f   :  { %v99_v18 = vadd.f32 %v98_v4, %v97_v58  ;;  %v84_v26 = vrot.slane %v83_v16, 1  ;;  %v460_v43 = vsub.f32 %v407_v0, %v125_v3  ;;  %v230_v3 = vmul.f32 511.0, %v324_v60 }
  0x90   :  { %v109_v17 = vadd.f32 %v108_v5, %v107_v62  ;;  %v102_v20 = vadd.f32 %v101_v11, %v100_v9  ;;  %v137_v21 = vmul.f32 %v448_v14, %v448_v14  ;;  %v71_v23 = vadd.f32 %v70_v19, %v69_v10 }
  0x91   :  { %v85_v33 = vadd.f32 %v84_v26, %v83_v16  ;;  %v141_v47 = vmul.f32 %v460_v43, %v460_v43  ;;  %vm234_vm2 = vweird.f32 %v324_v60 }
  0x92   :  { %v110_v22 = vrot.slane %v109_v17, 2  ;;  %v103_v24 = vrot.slane %v102_v20, 2  ;;  %v145_v25 = vsel %vm33_vm0, %v137_v21, 0.0  ;;  %v115_v2 = vadd.f32 %v99_v18, %v71_v23 }
  0x93   :  { %146 = vadd.xlane.f32.xlu2 %v145_v25  ;;  %v157_v50 = vsel %vm33_vm0, %v141_v47, 0.0  ;;  %v231_v18 = vsub.f32 1.0, %v230_v3 }
  0x94   :  { %v111_v27 = vadd.f32 %v110_v22, %v109_v17  ;;  %v104_v29 = vadd.f32 %v103_v24, %v102_v20  ;;  %v126_v32 = vmul.f32 %v124_v54, %v115_v2 }
  0x96   :  { %v112_v30 = vrot.slane %v111_v27, 1  ;;  %v105_v31 = vrot.slane %v104_v29, 1  ;;  %v454_v37 = vsub.f32 %v423_v8, %v126_v32 }
  0x98   :  { %v113_v34 = vadd.f32 %v112_v30, %v111_v27  ;;  %v106_v36 = vadd.f32 %v105_v31, %v104_v29  ;;  %v138_v40 = vmul.f32 %v454_v37, %v454_v37  ;;  %v232_v27 = vmul.f32 %v324_v60, %v231_v18 }
  0x9a   :  { %v117_v38 = vadd.f32 %v113_v34, %v85_v33  ;;  %v116_v39 = vadd.f32 %v106_v36, %v78_v35  ;;  %v148_v42 = vsel %vm33_vm0, %v138_v40, 0.0 }
  0x9b   :  { %149 = vadd.xlane.f32.xlu0 %v148_v42 }
  0x9c   :  { %v128_v41 = vmul.f32 %v124_v54, %v117_v38  ;;  %v127_v44 = vmul.f32 %v124_v54, %v116_v39 }
  0x9e   :  { %v463_v45 = vsub.f32 %v421_v7, %v128_v41  ;;  %v466_v46 = vsub.f32 %v409_v1, %v127_v44  ;;  %v476_v49 = vsub.f32 %v433_v13, %v127_v44  ;;  %v480_v1 = vsub.f32 %v419_v6, %v126_v32 }
  0x9f   :  { %v484_v51 = vsub.f32 %v431_v12, %v128_v41  ;;  %v233_v41 = vadd.f32 %v324_v60, %v232_v27 }
  0xa0   :  { %v140_v8 = vmul.f32 %v463_v45, %v463_v45  ;;  %v139_v48 = vmul.f32 %v466_v46, %v466_v46  ;;  %v143_v52 = vmul.f32 %v476_v49, %v476_v49  ;;  %v142_v13 = vmul.f32 %v480_v1, %v480_v1 }
  0xa1   :  { %v144_v53 = vmul.f32 %v484_v51, %v484_v51 }
  0xa2   :  { %v154_v0 = vsel %vm33_vm0, %v140_v8, 0.0  ;;  %v151_v7 = vsel %vm33_vm0, %v139_v48, 0.0  ;;  %v163_v54 = vsel %vm33_vm0, %v143_v52, 0.0  ;;  %v160_v6 = vsel %vm33_vm0, %v142_v13, 0.0 }
  0xa3   :  { %155 = vadd.xlane.f32.xlu2 %v154_v0  ;;  %152 = vadd.xlane.f32.xlu1 %v151_v7  ;;  %v166_v55 = vsel %vm33_vm0, %v144_v53, 0.0 }
  0xa4   :  { %158 = vadd.xlane.f32.xlu0 %v157_v50 }
  0xab   :  { %164 = vadd.xlane.f32.xlu2 %v163_v54  ;;  %161 = vadd.xlane.f32.xlu1 %v160_v6 }
  0xac   :  { %167 = vadd.xlane.f32.xlu0 %v166_v55  ;;  %v235_v55 = vsel %vm234_vm2, %v324_v60, %v233_v41 }
 0x106   :  { %v147_v12 = vpop.xlane.xlu2 %146 }
 0x107   :  { %v169_v56 = vsel %vm33_vm0, %v147_v12, 0.0 }
 0x108   :  { %v170_v58 = vrot.slane %v169_v56, 4 }
 0x10a   :  { %v171_v61 = vadd.f32 %v170_v58, %v169_v56 }
 0x10c   :  { %v172_v10 = vrot.slane %v171_v61, 2 }
 0x10e   :  { %v150_v59 = vpop.xlane.xlu0 %149  ;;  %v173_v23 = vadd.f32 %v172_v10, %v171_v61 }
 0x10f   :  { %v176_v62 = vsel %vm33_vm0, %v150_v59, 0.0 }
 0x110   :  { %v177_v4 = vrot.slane %v176_v62, 4  ;;  %v174_v32 = vrot.slane %v173_v23, 1 }
 0x112   :  { %v178_v20 = vadd.f32 %v177_v4, %v176_v62  ;;  %v175_v7 = vadd.f32 %v174_v32, %v173_v23 }
 0x114   :  { %v179_v2 = vrot.slane %v178_v20, 2 }
 0x116   :  { %v156_v63 = vpop.xlane.xlu2 %155  ;;  %v153_v9 = vpop.xlane.xlu1 %152  ;;  %v180_v8 = vadd.f32 %v179_v2, %v178_v20 }
 0x117   :  { %v190_v5 = vsel %vm33_vm0, %v156_v63, 0.0  ;;  %v183_v11 = vsel %vm33_vm0, %v153_v9, 0.0  ;;  %v159_v17 = vpop.xlane.xlu0 %158 }
 0x118   :  { %v191_v15 = vrot.slane %v190_v5, 4  ;;  %v184_v16 = vrot.slane %v183_v11, 4  ;;  %v197_v19 = vsel %vm33_vm0, %v159_v17, 0.0  ;;  %v181_v56 = vrot.slane %v180_v8, 1 }
 0x119   :  { %v198_v22 = vrot.slane %v197_v19, 4 }
 0x11a   :  { %v185_v21 = vadd.f32 %v184_v16, %v183_v11  ;;  %v192_v24 = vadd.f32 %v191_v15, %v190_v5  ;;  %v182_v10 = vadd.f32 %v181_v56, %v180_v8 }
 0x11b   :  { %v199_v25 = vadd.f32 %v198_v22, %v197_v19 }
 0x11c   :  { %v186_v26 = vrot.slane %v185_v21, 2  ;;  %v193_v35 = vrot.slane %v192_v24, 2 }
 0x11d   :  { %v200_v29 = vrot.slane %v199_v25, 2 }
 0x11e   :  { %v165_v28 = vpop.xlane.xlu2 %164  ;;  %v162_v31 = vpop.xlane.xlu1 %161  ;;  %v187_v40 = vadd.f32 %v186_v26, %v185_v21  ;;  %v194_v52 = vadd.f32 %v193_v35, %v192_v24 }
 0x11f   :  { %v211_v30 = vsel %vm33_vm0, %v165_v28, 0.0  ;;  %v204_v34 = vsel %vm33_vm0, %v162_v31, 0.0  ;;  %v201_v36 = vadd.f32 %v200_v29, %v199_v25  ;;  %v168_v39 = vpop.xlane.xlu0 %167 }
 0x120   :  { %v212_v33 = vrot.slane %v211_v30, 4  ;;  %v205_v38 = vrot.slane %v204_v34, 4  ;;  %v218_v44 = vsel %vm33_vm0, %v168_v39, 0.0  ;;  %v188_v6 = vrot.slane %v187_v40, 1 }
 0x121   :  { %v202_v47 = vrot.slane %v201_v36, 1  ;;  %v219_v0 = vrot.slane %v218_v44, 4  ;;  %v195_v62 = vrot.slane %v194_v52, 1 }
 0x122   :  { %v213_v42 = vadd.f32 %v212_v33, %v211_v30  ;;  %v206_v48 = vadd.f32 %v205_v38, %v204_v34  ;;  %v189_v5 = vadd.f32 %v188_v6, %v187_v40 }
 0x123   :  { %v203_v13 = vadd.f32 %v202_v47, %v201_v36  ;;  %v220_v54 = vadd.f32 %v219_v0, %v218_v44  ;;  %v196_v17 = vadd.f32 %v195_v62, %v194_v52 }
 0x124   :  { %v214_v50 = vrot.slane %v213_v42, 2  ;;  %v207_v53 = vrot.slane %v206_v48, 2 }
 0x125   :  { %v225_v57 = vadd.f32 %v203_v13, %v175_v7  ;;  %v221_v59 = vrot.slane %v220_v54, 2 }
 0x126   :  { %v215_v12 = vadd.f32 %v214_v50, %v213_v42  ;;  %v208_v58 = vadd.f32 %v207_v53, %v206_v48 }
 0x127   :  { %v236_v63 = vmul.f32 %v235_v55, %v225_v57  ;;  %v222_v4 = vadd.f32 %v221_v59, %v220_v54 }
 0x128   :  { %v216_v61 = vrot.slane %v215_v12, 1  ;;  %v209_v3 = vrot.slane %v208_v58, 1 }
 0x129   :  { %325 = vrsqrt.f32 %v236_v63  ;;  %v223_v15 = vrot.slane %v222_v4, 1  ;;  %vm246_vm4 = vweird.f32 %v236_v63 }
 0x12a   :  { %v217_v9 = vadd.f32 %v216_v61, %v215_v12  ;;  %v210_v11 = vadd.f32 %v209_v3, %v208_v58 }
 0x12b   :  { %v224_v60 = vadd.f32 %v223_v15, %v222_v4 }
 0x12c   :  { %v227_v16 = vadd.f32 %v217_v9, %v189_v5  ;;  %v226_v18 = vadd.f32 %v210_v11, %v182_v10 }
 0x12d   :  { %v228_v21 = vadd.f32 %v224_v60, %v196_v17 }
 0x12e   :  { %v238_v19 = vmul.f32 %v235_v55, %v227_v16  ;;  %v237_v20 = vmul.f32 %v235_v55, %v226_v18 }
 0x12f   :  { %v326_v22 = vpop.eup %325  ;;  %v239_v23 = vmul.f32 %v235_v55, %v228_v21 }
 0x130   :  { %327 = vrsqrt.f32 %v238_v19  ;;  %v241_v24 = vmul.f32 %v326_v22, %v236_v63  ;;  %vm247_vm3 = vweird.f32 %v326_v22  ;;  %vm266_vm8 = vweird.f32 %v238_v19 }
 0x131   :  { %329 = vrsqrt.f32 %v237_v20  ;;  %vm248_vm5 = vmor %vm246_vm4, %vm247_vm3  ;;  %vm256_vm10 = vweird.f32 %v237_v20  ;;  %vm276_vm13 = vweird.f32 %v239_v23 }
 0x132   :  { %331 = vrsqrt.f32 %v239_v23  ;;  %v242_v25 = vmul.f32 %v326_v22, %v241_v24 }
 0x134   :  { %v243_v27 = vmul.f32 0.5, %v242_v25 }
 0x136   :  { %v328_v26 = vpop.eup %327  ;;  %v244_v29 = vsub.f32 1.5, %v243_v27 }
 0x137   :  { %v330_v28 = vpop.eup %329  ;;  %v261_v2 = vmul.f32 %v328_v26, %v238_v19  ;;  %vm267_vm6 = vweird.f32 %v328_v26 }
 0x138   :  { %v251_v30 = vmul.f32 %v330_v28, %v237_v20  ;;  %v332_v31 = vpop.eup %331  ;;  %v245_v33 = vmul.f32 %v326_v22, %v244_v29  ;;  %vm257_vm7 = vweird.f32 %v330_v28  ;;  %vm268_vm9 = vmor %vm266_vm8, %vm267_vm6 }
 0x139   :  { %v262_v32 = vmul.f32 %v328_v26, %v261_v2  ;;  %v271_v35 = vmul.f32 %v332_v31, %v239_v23  ;;  %vm277_vm11 = vweird.f32 %v332_v31  ;;  %vm258_vm12 = vmor %vm256_vm10, %vm257_vm7 }
 0x13a   :  { %v252_v34 = vmul.f32 %v330_v28, %v251_v30  ;;  %v249_v38 = vsel %vm248_vm5, %v326_v22, %v245_v33  ;;  %vm278_vm14 = vmor %vm276_vm13, %vm277_vm11 }
 0x13b   :  { %v263_v36 = vmul.f32 0.5, %v262_v32  ;;  %v272_v40 = vmul.f32 %v332_v31, %v271_v35  ;;  %v280_v41 = vmul.f32 %v249_v38, %v448_v14  ;;  %v284_v42 = vmul.f32 %v249_v38, %v460_v43 }
 0x13c   :  { %v253_v39 = vmul.f32 0.5, %v252_v34 }
 0x13d   :  { %v264_v44 = vsub.f32 1.5, %v263_v36  ;;  %v273_v47 = vmul.f32 0.5, %v272_v40  ;;  %288 = vst [vmem:[#allocation5] sm:$0x3] %v280_v41 }
 0x13e   :  { %v254_v8 = vsub.f32 1.5, %v253_v39  ;;  %292 = vst [vmem:[#allocation5 + $0x8] sm:$0x3] %v284_v42 }
 0x13f   :  { %v265_v48 = vmul.f32 %v328_v26, %v264_v44  ;;  %v274_v7 = vsub.f32 1.5, %v273_v47 }
 0x140   :  { %v255_v0 = vmul.f32 %v330_v28, %v254_v8 }
 0x141   :  { %v269_v50 = vsel %vm268_vm9, %v328_v26, %v265_v48  ;;  %v275_v13 = vmul.f32 %v332_v31, %v274_v7 }
 0x142   :  { %v282_v14 = vmul.f32 %v269_v50, %v466_v46  ;;  %v286_v43 = vmul.f32 %v269_v50, %v476_v49  ;;  %v259_v52 = vsel %vm258_vm12, %v330_v28, %v255_v0 }
 0x143   :  { %v281_v53 = vmul.f32 %v259_v52, %v454_v37  ;;  %v285_v54 = vmul.f32 %v259_v52, %v480_v1  ;;  %v279_v6 = vsel %vm278_vm14, %v332_v31, %v275_v13 }
 0x144   :  { %290 = vst [vmem:[#allocation5 + $0x4] sm:$0x3] %v282_v14  ;;  %v283_v46 = vmul.f32 %v279_v6, %v463_v45  ;;  %v287_v49 = vmul.f32 %v279_v6, %v484_v51 }
 0x145   :  { %294 = vst [vmem:[#allocation5 + $0xc] sm:$0x3] %v286_v43 }
 0x146   :  { %289 = vst [vmem:[#allocation5 + $0x2] sm:$0x3] %v281_v53 }
 0x147   :  { %293 = vst [vmem:[#allocation5 + $0xa] sm:$0x3] %v285_v54 }
 0x148   :  { %291 = vst [vmem:[#allocation5 + $0x6] sm:$0x3] %v283_v46 }
 0x149   :  { %295 = vst [vmem:[#allocation5 + $0xe] sm:$0x3] %v287_v49 }
 0x14a   :  { %308 = dma.vmem_to_hbm [thread:$0]  %s301_s13, 256, %s303_s16, [#allocation4], %s386_s11, %s386_s11, %s387_s12  }
 0x14b   :  { %383 = dma.done.wait [#allocation4], 256  }
 0x14c   :  { %384 = vsyncadd [#allocation4], 4294967040 }
 0x14d   :  { %313 = vsyncpa [#allocation3], 1 }
 0x14e   :  { %314 = vsyncpa [#allocation4], 1 }

</bundles_post_ra>
